<compile_context>
chip_gen: v5e
topology: v5e:2x2
jax: 0.10.0
libtpu: 0.0.40
codegen_flags: <defaults>
</compile_context>

<pallas_src>
import functools

import jax
import jax.numpy as jnp
from jax.experimental import pallas as pl
from jax.experimental.pallas import tpu as pltpu


def _round_up(x, m):
    return ((x + m - 1) // m) * m


def _focal_loss_kernel(x_ref, t_ref, o_ref, acc_ref, *,
                       n_rows, tile_rows, tiles_per_core, gamma, eps):
    c = pl.program_id(0)          # outer "parallel" (per-TensorCore) index
    i = pl.program_id(1)          # reduction step within this core

    @pl.when(i == 0)
    def _():
        acc_ref[...] = jnp.zeros_like(acc_ref)

    x = x_ref[...].astype(jnp.float32)          # (tile_rows, C), cast on the VPU
    tgt = t_ref[...]                            # (tile_rows, 1) int32

    # numerically stable softmax over the class (lane) axis
    m = jnp.max(x, axis=-1, keepdims=True)
    e = jnp.exp(x - m)
    z = jnp.sum(e, axis=-1, keepdims=True)
    p = e / z
    p = jnp.clip(p, eps, 1.0 - eps)

    # one_hot(target, C) without a scatter: class-iota == target
    cols = jax.lax.broadcasted_iota(jnp.int32, p.shape, 1)
    onehot = cols == tgt

    loss = -jnp.log(p)
    if gamma != 0.0:
        g = float(gamma)
        if g.is_integer() and 0 < g <= 4:
            mod = 1.0 - p
            focal = mod
            for _ in range(int(g) - 1):
                focal = focal * mod
        else:
            # (1 - p) >= eps > 0 because of the clamp, so exp(g*log(.)) is safe
            focal = jnp.exp(g * jnp.log(1.0 - p))
        loss = loss * focal

    # mask ragged-tail rows (and fully redundant clamped tiles) to zero,
    # using the *unclamped* logical tile index
    rows = jax.lax.broadcasted_iota(jnp.int32, p.shape, 0)
    row_start = (c * tiles_per_core + i) * tile_rows
    valid = (rows + row_start) < n_rows

    acc_ref[...] += jnp.where(jnp.logical_and(onehot, valid), loss, 0.0)

    @pl.when(i == tiles_per_core - 1)
    def _():
        total = jnp.sum(acc_ref[...])           # one cross-lane reduce per core
        o_ref[...] = jnp.zeros_like(o_ref) + total


def focal_loss2(logits, target, gamma=0.0, eps=1e-7, tile_rows=None):
    """Pallas TPU forward pass of FocalLoss2; returns the scalar summed loss."""
    assert logits.ndim == 2, "FocalLoss2 expects (N, C) logits"
    n_rows, n_classes = logits.shape
    assert target.shape == (n_rows,)

    itemsize = jnp.dtype(logits.dtype).itemsize
    if tile_rows is None:
        # target ~1 MiB logits blocks (native dtype), multiple of 8 sublanes
        tile_rows = max(8, ((1 << 20) // max(n_classes * itemsize, 1)) // 8 * 8)
        tile_rows = min(tile_rows, 16384)
    tile_rows = max(8, _round_up(int(tile_rows), 8))
    tile_rows = min(tile_rows, _round_up(n_rows, 8))

    num_tiles = -(-n_rows // tile_rows)
    num_cores = 2 if num_tiles >= 2 else 1      # shard the reduction across v7x TCs
    tiles_per_core = -(-num_tiles // num_cores)

    def idx_map(c, i):
        # clamp so no DMA ever starts fully out of bounds; the redundant
        # (clamped) tile is zeroed inside the kernel via the logical row mask.
        return (jnp.minimum(c * tiles_per_core + i, num_tiles - 1), 0)

    kernel = functools.partial(
        _focal_loss_kernel,
        n_rows=n_rows,
        tile_rows=tile_rows,
        tiles_per_core=tiles_per_core,
        gamma=float(gamma),
        eps=float(eps),
    )

    out = pl.pallas_call(
        kernel,
        out_shape=jax.ShapeDtypeStruct((num_cores, 8, 128), jnp.float32),
        grid_spec=pltpu.PrefetchScalarGridSpec(
            num_scalar_prefetch=0,
            grid=(num_cores, tiles_per_core),
            in_specs=[
                pl.BlockSpec((tile_rows, n_classes), idx_map),   # logits, native dtype
                pl.BlockSpec((tile_rows, 1), idx_map),           # targets
            ],
            out_specs=pl.BlockSpec((1, 8, 128), lambda c, i: (c, 0, 0)),
            scratch_shapes=[pltpu.VMEM((tile_rows, n_classes), jnp.float32)],
        ),
        compiler_params=pltpu.CompilerParams(
            dimension_semantics=("parallel", "arbitrary"),
        ),
    )(logits, target.reshape(n_rows, 1).astype(jnp.int32))

    # one partial sum per core -> scalar (FocalLoss2 returns the sum, not mean)
    return jnp.sum(out[:, 0, 0])


def _focal_loss2_ref(logits, target, gamma=0.0, eps=1e-7):
    p = jax.nn.softmax(logits.astype(jnp.float32), axis=-1)
    p = jnp.clip(p, eps, 1.0 - eps)
    y = jax.nn.one_hot(target, logits.shape[-1], dtype=jnp.float32)
    loss = -y * jnp.log(p)
    loss = loss * (1.0 - p) ** gamma
    return jnp.sum(loss)


if __name__ == "__main__":
    key = jax.random.PRNGKey(0)
    k1, k2 = jax.random.split(key)

    N, C = 100, 16                      # small, ragged N (not a multiple of 8)
    logits = jax.random.normal(k1, (N, C), dtype=jnp.float32) * 3.0
    target = jax.random.randint(k2, (N,), 0, C, dtype=jnp.int32)

    # small tiles: exercises multi-tile pipelining, the 2-way parallel split,
    # the clamped redundant tile and the ragged-tail masking
    for gamma in (0.0, 2.0):
        loss = focal_loss2(logits, target, gamma=gamma, tile_rows=16)
        jax.block_until_ready(loss)
        ref = _focal_loss2_ref(logits, target, gamma=gamma)
        assert jnp.allclose(loss, ref, rtol=1e-4, atol=1e-4), (gamma, loss, ref)

    # default (large-block) tiling path
    loss = focal_loss2(logits, target)
    jax.block_until_ready(loss)
    ref = _focal_loss2_ref(logits, target)
    assert jnp.allclose(loss, ref, rtol=1e-4, atol=1e-4), (loss, ref)

    print("KERNEL_OK")
</pallas_src>

<mosaic_0001>
module attributes {stable_mosaic.version = 11 : i64} {
  func.func @_focal_loss_kernel(%arg0: i32, %arg1: i32, %arg2: memref<16x16xf32, #tpu.memory_space<vmem>>, %arg3: memref<16x1xi32, #tpu.memory_space<vmem>>, %arg4: memref<1x8x128xf32, #tpu.memory_space<vmem>>, %arg5: memref<16x16xf32, #tpu.memory_space<vmem>>) attributes {dimension_semantics = [#tpu.dimension_semantics<parallel>, #tpu.dimension_semantics<arbitrary>], iteration_bounds = array<i64: 2, 4>, scalar_prefetch = 0 : i64, scratch_operands = 1 : i64, tpu.core_type = #tpu.core_type<tc>, window_params = [{transform_indices = @transform_0, window_bounds = array<i64: 16, 16>}, {transform_indices = @transform_1, window_bounds = array<i64: 16, 1>}, {transform_indices = @transform_2, window_bounds = array<i64: 1, 8, 128>}]} {
    %c0_i32 = arith.constant 0 : i32
    %0 = arith.cmpi eq, %arg1, %c0_i32 : i32
    %1 = arith.extui %0 : i1 to i32
    %c0_i32_0 = arith.constant 0 : i32
    %2 = arith.cmpi ne, %1, %c0_i32_0 : i32
    scf.if %2 {
      %cst_14 = arith.constant 0.000000e+00 : f32
      %41 = vector.broadcast %cst_14 : f32 to vector<16x16xf32>
      %c0_15 = arith.constant 0 : index
      %c0_16 = arith.constant 0 : index
      %42 = vector.load %arg5[%c0_15, %c0_16] : memref<16x16xf32, #tpu.memory_space<vmem>>, vector<16x16xf32>
      tpu.vector_store %arg5[%c0_15, %c0_16], %41 {strides = array<i32>} : memref<16x16xf32, #tpu.memory_space<vmem>>, vector<16x16xf32>,
    } else {
    }
    %c0 = arith.constant 0 : index
    %c0_1 = arith.constant 0 : index
    %3 = vector.load %arg2[%c0, %c0_1] : memref<16x16xf32, #tpu.memory_space<vmem>>, vector<16x16xf32>
    %c0_2 = arith.constant 0 : index
    %c0_3 = arith.constant 0 : index
    %4 = vector.load %arg3[%c0_2, %c0_3] : memref<16x1xi32, #tpu.memory_space<vmem>>, vector<16x1xi32>
    %cst = arith.constant dense<0xFF800000> : vector<16xf32>
    %5 = vector.multi_reduction <maximumf>, %3, %cst [1] : vector<16x16xf32> to vector<16xf32>
    %6 = vector.shape_cast %5 : vector<16xf32> to vector<16x1xf32>
    %7 = vector.broadcast %6 : vector<16x1xf32> to vector<16x16xf32>
    %8 = arith.subf %3, %7 : vector<16x16xf32>
    %9 = math.exp %8 : vector<16x16xf32>
    %cst_4 = arith.constant dense<0.000000e+00> : vector<16xf32>
    %10 = vector.multi_reduction <add>, %9, %cst_4 [1] : vector<16x16xf32> to vector<16xf32>
    %11 = vector.shape_cast %10 : vector<16xf32> to vector<16x1xf32>
    %12 = vector.broadcast %11 : vector<16x1xf32> to vector<16x16xf32>
    %13 = arith.divf %9, %12 : vector<16x16xf32>
    %cst_5 = arith.constant 1.000000e-07 : f32
    %cst_6 = arith.constant 0.99999988 : f32
    %14 = vector.broadcast %cst_5 : f32 to vector<16x16xf32>
    %15 = arith.maximumf %14, %13 : vector<16x16xf32>
    %16 = vector.broadcast %cst_6 : f32 to vector<16x16xf32>
    %17 = arith.minimumf %16, %15 : vector<16x16xf32>
    %18 = tpu.iota {dimensions = array<i32: 1>} : vector<16x16xi32>
    %19 = vector.broadcast %4 : vector<16x1xi32> to vector<16x16xi32>
    %20 = arith.cmpi eq, %18, %19 : vector<16x16xi32>
    %21 = math.log %17 : vector<16x16xf32>
    %cst_7 = arith.constant 0.000000e+00 : f32
    %22 = vector.broadcast %cst_7 : f32 to vector<16x16xf32>
    %23 = arith.subf %22, %21 : vector<16x16xf32>
    %24 = tpu.iota {dimensions = array<i32: 0>} : vector<16x16xi32>
    %c4_i32 = arith.constant 4 : i32
    %25 = arith.muli %arg0, %c4_i32 : i32
    %26 = arith.addi %25, %arg1 : i32
    %c16_i32 = arith.constant 16 : i32
    %27 = arith.muli %26, %c16_i32 : i32
    %28 = vector.broadcast %27 : i32 to vector<16x16xi32>
    %29 = arith.addi %24, %28 : vector<16x16xi32>
    %c100_i32 = arith.constant 100 : i32
    %30 = vector.broadcast %c100_i32 : i32 to vector<16x16xi32>
    %31 = arith.cmpi slt, %29, %30 : vector<16x16xi32>
    %c0_8 = arith.constant 0 : index
    %c0_9 = arith.constant 0 : index
    %32 = vector.load %arg5[%c0_8, %c0_9] : memref<16x16xf32, #tpu.memory_space<vmem>>, vector<16x16xf32>
    %33 = arith.andi %20, %31 : vector<16x16xi1>
    %cst_10 = arith.constant 0.000000e+00 : f32
    %34 = vector.broadcast %cst_10 : f32 to vector<16x16xf32>
    %35 = arith.select %33, %23, %34 : vector<16x16xi1>, vector<16x16xf32>
    %36 = arith.addf %32, %35 : vector<16x16xf32>
    %c0_11 = arith.constant 0 : index
    %c0_12 = arith.constant 0 : index
    %37 = vector.load %arg5[%c0_11, %c0_12] : memref<16x16xf32, #tpu.memory_space<vmem>>, vector<16x16xf32>
    tpu.vector_store %arg5[%c0_11, %c0_12], %36 {strides = array<i32>} : memref<16x16xf32, #tpu.memory_space<vmem>>, vector<16x16xf32>,
    %c3_i32 = arith.constant 3 : i32
    %38 = arith.cmpi eq, %arg1, %c3_i32 : i32
    %39 = arith.extui %38 : i1 to i32
    %c0_i32_13 = arith.constant 0 : i32
    %40 = arith.cmpi ne, %39, %c0_i32_13 : i32
    scf.if %40 {
      %c0_14 = arith.constant 0 : index
      %c0_15 = arith.constant 0 : index
      %41 = vector.load %arg5[%c0_14, %c0_15] : memref<16x16xf32, #tpu.memory_space<vmem>>, vector<16x16xf32>
      %42 = vector.shape_cast %41 : vector<16x16xf32> to vector<1x16x16xf32>
      %cst_16 = arith.constant dense<0.000000e+00> : vector<1xf32>
      %43 = vector.multi_reduction <add>, %42, %cst_16 [1, 2] : vector<1x16x16xf32> to vector<1xf32>
      %44 = vector.shape_cast %43 : vector<1xf32> to vector<1x1x1xf32>
      %45 = vector.extract %44[0, 0, 0] : f32 from vector<1x1x1xf32>
      %cst_17 = arith.constant 0.000000e+00 : f32
      %46 = vector.broadcast %cst_17 : f32 to vector<1x8x128xf32>
      %47 = vector.broadcast %45 : f32 to vector<1x8x128xf32>
      %48 = arith.addf %46, %47 : vector<1x8x128xf32>
      %c0_18 = arith.constant 0 : index
      %c0_19 = arith.constant 0 : index
      %c0_20 = arith.constant 0 : index
      %49 = vector.load %arg4[%c0_18, %c0_19, %c0_20] : memref<1x8x128xf32, #tpu.memory_space<vmem>>, vector<1x8x128xf32>
      tpu.vector_store %arg4[%c0_18, %c0_19, %c0_20], %48 {strides = array<i32>} : memref<1x8x128xf32, #tpu.memory_space<vmem>>, vector<1x8x128xf32>,
    } else {
    }
    return
  }
  func.func @transform_0(%arg0: i32, %arg1: i32) -> (i32, i32) {
    %c4_i32 = arith.constant 4 : i32
    %0 = arith.muli %arg0, %c4_i32 : i32
    %1 = arith.addi %0, %arg1 : i32
    %c6_i32 = arith.constant 6 : i32
    %2 = arith.minsi %1, %c6_i32 : i32
    %c0_i32 = arith.constant 0 : i32
    %c0_i32_0 = arith.constant 0 : i32
    return %2, %c0_i32 : i32, i32
  }
  func.func @transform_1(%arg0: i32, %arg1: i32) -> (i32, i32) {
    %c4_i32 = arith.constant 4 : i32
    %0 = arith.muli %arg0, %c4_i32 : i32
    %1 = arith.addi %0, %arg1 : i32
    %c6_i32 = arith.constant 6 : i32
    %2 = arith.minsi %1, %c6_i32 : i32
    %c0_i32 = arith.constant 0 : i32
    %c0_i32_0 = arith.constant 0 : i32
    return %2, %c0_i32 : i32, i32
  }
  func.func @transform_2(%arg0: i32, %arg1: i32) -> (i32, i32, i32) {
    %c0_i32 = arith.constant 0 : i32
    %c0_i32_0 = arith.constant 0 : i32
    %c0_i32_1 = arith.constant 0 : i32
    return %arg0, %c0_i32, %c0_i32_0 : i32, i32, i32
  }
}

</mosaic_0001>

<bundles_post_ra>
// kernel: tpu_custom_call.1
= control target key start
LH: loop header
LB: loop body
LE: loop exit
PB: predicated region body
PF: predicated region fallthrough
CT: control target
= control target key end

     0   :  { %7 = vsyncpa [#allocation4], 0  ;;  %s866_s0 = inlined_call_operand.vmem [shape: f32[100,16], index: 0, kind: input, shape index: {}]   ;;  %s867_s1 = inlined_call_operand.vmem [shape: s32[100,1], index: 1, kind: input, shape index: {}]   ;;  %s868_s2 = inlined_call_operand.hbm [shape: f32[2,8,128], index: 2, kind: output, shape index: {}]  }
   0x1   :  { %9 = vsyncpa [#allocation4 + $0x1], 0  ;;  %s720_s9 = smov 0   ;;  %s722_s10 = smov 0  }
   0x2   :  { %s724_s11 = smov 0   ;;  %s726_s12 = smov 0  }
   0x3   :  { %s728_s13 = smov 0   ;;  %s730_s14 = smov 0  }
   0x4   :  { %s732_s15 = smov 0   ;;  %s734_s16 = smov 0  }
   0x5 LB: > { %s494_s17 = sadd.s32 4294967295, %s701_s16   ;;  %s495_s18 = sadd.s32 4294967294, %s701_s16   ;;  %s701_s16 = sphi %s734_s16, %s15_s16   ;;  %s697_s15 = sphi %s732_s15, %s877_s15   ;;  %s693_s14 = sphi %s730_s14, %s876_s14   ;;  %s689_s13 = sphi %s728_s13, %s875_s13   ;;  %s685_s12 = sphi %s726_s12, %s874_s12   ;;  %s681_s11 = sphi %s724_s11, %s873_s11   ;;  %s677_s10 = sphi %s722_s10, %s872_s10   ;;  %s673_s9 = sphi %s720_s9, %s871_s9  }
   0x6   : > { %s24_s19 = sadd.s32 1, %s693_s14  ;;  %s27_s20 = sadd.s32 1, %s697_s15 }
   0x7   : > { %p25_p0 = scmp.ge.s32.totalorder %s24_s19, 4  ;;  %p112_p1 = scmp.ne.s32.totalorder %s681_s11, %s677_s10 }
   0x8   : > { %p113_p2 = scmp.eq.s32.totalorder %s494_s17, 7  ;;  %p118_p4 = scmp.ne.s32.totalorder %s677_s10, %s673_s9 }
   0x9   : > { %s879_s19 = smov (%p25_p0, %s24_s19), 0  ;;  %s881_s20 = smov (!%p25_p0, %s27_s20), %s697_s15 }
   0xa   : > { %p769_p3 = por %p113_p2, %p112_p1  ;;  %p29_p5 = scmp.ge.s32.totalorder %s881_s20, 2 }
   0xb   : > { %p119_p6 = scmp.eq.s32.totalorder %s495_s18, 7  ;;  %p502_p7 = scmp.ge.s32.totalorder %s701_s16, 1 }
   0xc   : > { %p187_p8 = scmp.lt.s32.totalorder %s701_s16, 9  ;;  %s883_s20 = smov (%p29_p5, %s881_s20), 0 }
   0xd   : > { %p779_p9 = por %p119_p6, %p118_p4  ;;  %s99_s23 = ssub.s32 %s697_s15, %s883_s20 }
   0xe   : > { %p188_p10 = pnand %p502_p7, %p187_p8  ;;  %s102_s24 = sadd.s32 1, %s681_s11 }
   0xf   : > { %p100_p11 = scmp.eq.s32.totalorder %s99_s23, 0  ;;  %s227_s26 = sand.u32 (!%p188_p10), 1, %s677_s10  }
  0x10   : > { %191 = sbr.rel (%p188_p10) target bundleno = 529 (0x211), region = 28  ;;  %s504_s27 = sshll.u32 (!%p188_p10), %s689_s13, 2 }
  0x11   : > { %s787_s25 = scalar_select %p100_p11, %s681_s11, %s102_s24  }
  0x12   : > { %s793_s28 = sshll.u32 (!%p188_p10), %s227_s26, 3  ;;  %s796_s29 = sadd.s32 (!%p188_p10), %s685_s12, %s504_s27 }
  0x13   : > { %p232_p12 = scmp.lt.s32.totalorder (!%p188_p10), %s796_s29, 6  ;;  %s229_s23 = scalar_lea.vmem (!%p188_p10), [#allocation3], %s793_s28 }
  0x14   : > { %p510_p0 = scmp.ne.s32.totalorder (!%p188_p10), %s685_s12, 0 }
  0x15   : > { %s233_s30 = scalar_select %p232_p12, %s796_s29, 6 }
  0x17   : > { %s505_s3 = sshll.u32 %s233_s30, 1 }
  0x18   : > { %p239_p13 = scmp.lt.s32.totalorder %s505_s3, 12  ;;  %277 = sbr.rel (%p510_p0) target bundleno = 32 (0x20), region = 32 }
  0x1a   : > { %s885_s3 = smov (!%p239_p13, %s505_s3), 12 }
  0x1b   : > { %s506_s4 = sshll.u32 %s885_s3, 3 }
  0x1c   : > { %s242_s7 = scalar_lea.vmem %s866_s0, %s506_s4  ;;  %s264_s18 = scalar_lea.vmem %s867_s1, %s506_s4 }
  0x1d   : > { %vm278_vm0 = vcmask 130048   ;;  %v703_v0 = vmov 0.0  }
  0x1e   : > { %279 = vst.msk [vmem:[#allocation2] sm:$0xff] %vm278_vm0, %v703_v0 }
  0x1f   : > { %280 = vst.msk [vmem:[#allocation2 + $0x8] sm:$0xff] %vm278_vm0, %v703_v0 }
  0x20 PF: > { %v281_v1 = vld [vmem:[%s242_s7] sm:$0xff]  ;;  %vm285_vm1 = vcmask 130048   ;;  %v282_v3 = vld [vmem:[%s242_s7 + $0x8] sm:$0xff]  ;;  %v704_v6 = vmov 0   ;;  %v338_v35 = vlaneseq  ;;  %s512_s24 = sshll.u32 %s796_s29, 4  ;;  %p513_p1 = scmp.ne.s32.totalorder %s685_s12, 3 }
  0x21   : > { %v286_v2 = vsel %vm285_vm1, %v281_v1, -inf  ;;  %v289_v4 = vsel %vm285_vm1, %v282_v3, -inf  ;;  %v283_v5 = vld [vmem:[%s264_s18] sm:$0xff]  ;;  %593 = vset.pattern.permute.xlu2 %v704_v6  ;;  %594 = vset.pattern.permute.xlu0 %v704_v6  ;;  %v284_v7 = vld [vmem:[%s264_s18 + $0x8] sm:$0xff]  ;;  %v360_v40 = vstv %s512_s24 }
  0x22   : > { %287 = vmax.xlane.f32.xlu0 %v286_v2  ;;  %341 = vperm.xlu2 %593, %v283_v5   ;;  %v355_v43 = vshrl.u32 %v338_v35, 7  ;;  %v339_v46 = vand.u32 127, %v338_v35 }
  0x24   : > { %v361_v47 = vadd.s32 %v360_v40, %v355_v43  ;;  %v356_v54 = vadd.s32 8, %v355_v43 }
  0x25   : > { %v365_v55 = vld [vmem:[#allocation2] sm:$0xff] }
  0x26   : > { %vm363_vm10 = vcmp.lt.s32.totalorder %v361_v47, 100  ;;  %v362_v58 = vadd.s32 %v360_v40, %v356_v54  ;;  %v366_v63 = vld [vmem:[#allocation2 + $0x8] sm:$0xff] }
  0x28   : > { %vm364_vm13 = vcmp.lt.s32.totalorder %v362_v58, 100 }
  0x2a   : > { %290 = vmax.xlane.f32.xlu0 %v289_v4  ;;  %344 = vperm.xlu2 %593, %v284_v7  }
  0x7c   : > { %v342_v48 = vpop.permute.xlu2 %341 }
  0x7d   : > { %vm346_vm11 = vcmp.eq.s32.totalorder %v339_v46, %v342_v48 }
  0x7e   : > { %vm367_vm12 = vmand %vm346_vm11, %vm363_vm10 }
  0x84   : > { %v345_v60 = vpop.permute.xlu2 %344 }
  0x85   : > { %vm347_vm14 = vcmp.eq.s32.totalorder %v339_v46, %v345_v60 }
  0x86   : > { %vm368_vm15 = vmand %vm347_vm14, %vm364_vm13 }
  0x95   : > { %v288_v8 = vpop.xlane.xlu0 %287 }
  0x96   : > { %v292_v9 = vsub.f32 %v281_v1, %v288_v8 }
  0x98   : > { %v294_v10 = vmul.f32 1.442695, %v292_v9 }
  0x9a   : > { %595 = vpow2.f32 %v294_v10 }
  0x9d   : > { %v291_v11 = vpop.xlane.xlu0 %290 }
  0x9e   : > { %v293_v12 = vsub.f32 %v282_v3, %v291_v11 }
  0xa0   : > { %v596_v13 = vpop.eup %595  ;;  %v296_v14 = vmul.f32 1.442695, %v293_v12 }
  0xa1   : > { %v298_v15 = vsel %vm285_vm1, %v596_v13, 0.0 }
  0xa2   : > { %597 = vpow2.f32 %v296_v14  ;;  %299 = vadd.xlane.f32.xlu1 %v298_v15 }
  0xa8   : > { %v598_v16 = vpop.eup %597 }
  0xa9   : > { %v301_v17 = vsel %vm285_vm1, %v598_v16, 0.0 }
  0xaa   : > { %302 = vadd.xlane.f32.xlu1 %v301_v17 }
 0x115   : > { %v300_v18 = vpop.xlane.xlu1 %299 }
 0x116   : > { %599 = vrcp.f32 %v300_v18  ;;  %v315_v23 = vand.u32 2147483648, %v300_v18  ;;  %v313_v25 = vand.u32 2147483647, %v300_v18  ;;  %vm309_vm3 = vweird.f32 %v300_v18 }
 0x118   : > { %v316_v28 = vor.u32 1.1754944e-38, %v315_v23  ;;  %vm314_vm5 = vcmp.eq.f32.partialorder %v313_v25, 8.507059e+37 }
 0x11c   : > { %v600_v19 = vpop.eup %599 }
 0x11d   : > { %v305_v20 = vmul.f32 %v600_v19, %v300_v18  ;;  %v303_v21 = vpop.xlane.xlu1 %302  ;;  %vm310_vm2 = vweird.f32 %v600_v19 }
 0x11e   : > { %601 = vrcp.f32 %v303_v21  ;;  %vm311_vm4 = vmor %vm309_vm3, %vm310_vm2  ;;  %v330_v34 = vand.u32 2147483648, %v303_v21  ;;  %v328_v37 = vand.u32 2147483647, %v303_v21  ;;  %vm324_vm7 = vweird.f32 %v303_v21 }
 0x11f   : > { %v306_v22 = vsub.f32 1.0, %v305_v20 }
 0x120   : > { %v331_v42 = vor.u32 1.1754944e-38, %v330_v34  ;;  %vm329_vm9 = vcmp.eq.f32.partialorder %v328_v37, 8.507059e+37 }
 0x121   : > { %v307_v24 = vmul.f32 %v600_v19, %v306_v22 }
 0x123   : > { %v308_v26 = vadd.f32 %v600_v19, %v307_v24 }
 0x124   : > { %v602_v27 = vpop.eup %601 }
 0x125   : > { %v320_v29 = vmul.f32 %v602_v27, %v303_v21  ;;  %v312_v30 = vsel %vm311_vm4, %v600_v19, %v308_v26  ;;  %vm325_vm6 = vweird.f32 %v602_v27 }
 0x126   : > { %v317_v31 = vsel %vm314_vm5, %v316_v28, %v312_v30  ;;  %vm326_vm8 = vmor %vm324_vm7, %vm325_vm6 }
 0x127   : > { %v321_v32 = vsub.f32 1.0, %v320_v29  ;;  %v318_v33 = vmul.f32 %v596_v13, %v317_v31 }
 0x129   : > { %v322_v36 = vmul.f32 %v602_v27, %v321_v32  ;;  %v334_v38 = vmax.f32 %v318_v33, 1e-07 }
 0x12b   : > { %v323_v39 = vadd.f32 %v602_v27, %v322_v36  ;;  %v336_v41 = vmin.f32 %v334_v38, 0.9999999 }
 0x12d   : > { %v327_v44 = vsel %vm326_vm8, %v602_v27, %v323_v39  ;;  %603 = vlog2.f32 %v336_v41 }
 0x12e   : > { %v332_v45 = vsel %vm329_vm9, %v331_v42, %v327_v44 }
 0x12f   : > { %v333_v49 = vmul.f32 %v598_v16, %v332_v45 }
 0x131   : > { %v335_v50 = vmax.f32 %v333_v49, 1e-07 }
 0x133   : > { %v604_v51 = vpop.eup %603  ;;  %v337_v52 = vmin.f32 %v335_v50, 0.9999999 }
 0x134   : > { %v349_v53 = vmul.f32 0.6931472, %v604_v51 }
 0x135   : > { %605 = vlog2.f32 %v337_v52 }
 0x136   : > { %v352_v56 = vsub.f32 0.0, %v349_v53 }
 0x138   : > { %v369_v57 = vsel %vm367_vm12, %v352_v56, 0.0 }
 0x139   : > { %v371_v59 = vadd.f32 %v369_v57, %v365_v55 }
 0x13b   : > { %v606_v61 = vpop.eup %605  ;;  %373 = vst.msk [vmem:[#allocation2] sm:$0xff] %vm285_vm1, %v371_v59 }
 0x13c   : > { %v351_v62 = vmul.f32 0.6931472, %v606_v61 }
 0x13e   : > { %v353_v0 = vsub.f32 0.0, %v351_v62 }
 0x13f   : > { %378 = sbr.rel (%p513_p1) target bundleno = 514 (0x202), region = 36 }
 0x140   : > { %v370_v1 = vsel %vm368_vm15, %v353_v0, 0.0 }
 0x141   : > { %v372_v2 = vadd.f32 %v370_v1, %v366_v63 }
 0x143   : > { %374 = vst.msk [vmem:[#allocation2 + $0x8] sm:$0xff] %vm285_vm1, %v372_v2 }
 0x144   : > { %v379_v3 = vld [vmem:[#allocation2] sm:$0xff] }
 0x145   : > { %v381_v5 = vsel %vm285_vm1, %v379_v3, 0.0 }
 0x14a   : > { %v380_v4 = vld [vmem:[#allocation2 + $0x8] sm:$0xff] }
 0x14b   : > { %v382_v6 = vsel %vm285_vm1, %v380_v4, 0.0 }
 0x14c   : > { %v383_v7 = vadd.f32 %v382_v6, %v381_v5 }
 0x14e   : > { %384 = vadd.xlane.f32.xlu0 %v383_v7 }
 0x1c1   : > { %v385_v8 = vpop.xlane.xlu0 %384 }
 0x1c2   : > { %v386_v9 = vrot.slane %v385_v8, 4 }
 0x1c4   : > { %v387_v10 = vadd.f32 %v386_v9, %v385_v8 }
 0x1c6   : > { %v388_v11 = vrot.slane %v387_v10, 2 }
 0x1c8   : > { %v389_v12 = vadd.f32 %v388_v11, %v387_v10 }
 0x1ca   : > { %v390_v13 = vrot.slane %v389_v12, 1 }
 0x1cc   : > { %v391_v14 = vadd.f32 %v390_v13, %v389_v12 }
 0x1ce   : > { %518 = vpush %v391_v14 }
 0x1ff   : > { %s519_s27 = spop %518 }
 0x200   : > { %v393_v15 = vstv %s519_s27 }
 0x201   : > { %395 = vst [vmem:[%s229_s23] sm:$0xff] %v393_v15 }
 0x202 PF: > { %s515_s12 = sshll.u32 %s689_s13, 3  ;;  %s409_s4 = sshll.u32 %s229_s23, 4  ;;  %s410_s4 = int_to_ptr.vmem [resolvable:$true] %s409_s4 }
 0x203   : > { %s407_s3 = scalar_lea.hbm %s868_s2, %s515_s12  ;;  %s397_s6 = scalar_lea.sflag [#allocation4], %s227_s26 }
 0x204   : > { %s411_s5 = sshll.u32 %s407_s3, 4  ;;  %s627_s18 = scalar_lea.hbm %s868_s2, 16  ;;  %s412_s5 = int_to_ptr.hbm [resolvable:$true] %s411_s5 }
 0x205   : > { %s621_s7 = sshra.s32 %s412_s5, 4  ;;  %s622_s7 = int_to_ptr.hbm [resolvable:$true] %s621_s7 }
 0x206   : > { %s623_s8 = scalar_lea.hbm %s622_s7, 8  ;;  %p628_p6 = scmp.lt.s32.totalorder %s622_s7, %s868_s2 }
 0x207   : > { %p624_p2 = scmp.ne.s32.totalorder %s622_s7, %s623_s8  ;;  %p629_p7 = scmp.lt.s32.totalorder %s627_s18, %s623_s8 }
 0x209   : > { %p625_p4 = pnand %p624_p2, %p769_p3  ;;  %p630_p8 = por %p629_p7, %p628_p6 }
 0x20b   : > { %p626_p5 = pneg %p625_p4 }
 0x20d   : > { %p631_p10 = pnand %p630_p8, %p626_p5 }
 0x20f   : > { %634 = shalt.err (!%p631_p10)
}
 0x210   : > { %520 = dma.vmem_to_hbm [thread:$0]  (%p769_p3), %s410_s4, 128, %s412_s5, %s397_s6  }
 0x211 PF: > { %p526_p11 = scmp.ge.s32.totalorder %s701_s16, 2  ;;  %s423_s26 = sand.u32 1, %s673_s9  }
 0x212   : > { %s424_s28 = scalar_lea.sflag [#allocation4], %s423_s26 }
 0x213   : > { %p523_p12 = pnand %p526_p11, %p779_p9 }
 0x215   : > { %p524_p13 = pneg %p523_p12 }
 0x217   : > { %668 = dma.done.wait (%p524_p13), %s424_s28, 128  }
 0x218   : > { %670 = vsyncadd (%p524_p13), %s424_s28, 4294967168  ;;  %s15_s16 = sadd.s32 1, %s701_s16   ;;  %s871_s9 = smov %s677_s10 }
 0x219   : > { %p12_p0 = scmp.ge.s32.totalorder %s15_s16, 10   ;;  %s872_s10 = smov %s681_s11 }
 0x21a   : > { %s873_s11 = smov %s787_s25  ;;  %s874_s12 = smov %s693_s14 }
 0x21b   : > { %s875_s13 = smov %s697_s15  ;;  %s876_s14 = smov %s879_s19 }
 0x21c   : > { %s877_s15 = smov %s883_s20  ;;  %14 = sbr.rel (!%p12_p0) target bundleno = 5 (0x5), region = 74 }
 0x221   :  { %430 = vsyncpa [#allocation4], 1 }
 0x222   :  { %432 = vsyncpa [#allocation4 + $0x1], 1 }

</bundles_post_ra>
